<compile_context>
chip_gen: v7x
topology: tpu7x:2x2x1
jax: 0.10.0
libtpu: 0.0.40
codegen_flags: <defaults>
</compile_context>

<pallas_src>
import functools

import jax
import jax.numpy as jnp
from jax.experimental import pallas as pl
from jax.experimental.pallas import tpu as pltpu

LANES = 128          # lane width (last dim)
TILE_R_MAX = 1024    # rows per tile: 1024x128 f32 = 512 KiB per input buffer


def _dice_kernel(pred_ref, targ_ref, out_ref, inter_acc, union_acc, *,
                 total, smooth):
    i = pl.program_id(0)
    tile_r, lanes = pred_ref.shape

    @pl.when(i == 0)
    def _():
        inter_acc[...] = jnp.zeros_like(inter_acc)
        union_acc[...] = jnp.zeros_like(union_acc)

    # Flat-element-index mask: covers both the lane-padding tail and any
    # row overhang of the last (partial) block. Pure VPU work, hidden under DMA.
    row = jax.lax.broadcasted_iota(jnp.int32, (tile_r, lanes), 0)
    col = jax.lax.broadcasted_iota(jnp.int32, (tile_r, lanes), 1)
    flat = (i * tile_r + row) * lanes + col
    mask = flat < total

    p = jnp.where(mask, jax.nn.sigmoid(pred_ref[...].astype(jnp.float32)), 0.0)
    t = jnp.where(mask, targ_ref[...].astype(jnp.float32), 0.0)

    # vreg-shaped partial sums: elementwise VALU adds only, no per-tile XLU.
    inter_acc[...] += p * t
    union_acc[...] += p + t

    @pl.when(i == pl.num_programs(0) - 1)
    def _():
        intersection = jnp.sum(inter_acc[...])
        union = jnp.sum(union_acc[...])
        dice = (2.0 * intersection + smooth) / (union + smooth)
        out_ref[0] = 1.0 - dice


def dice_loss(pred, target, smooth=1.0):
    """Pallas implementation of DiceLoss.forward(pred, target)."""
    assert pred.shape == target.shape
    total = pred.size

    # Ravel (free) to a lane-dense slab. No dtype upcast here: bf16 inputs stay
    # bf16 on the wire; the kernel upcasts tiles to f32.
    pf = jnp.ravel(pred)
    tf = jnp.ravel(target)

    # Only pad if the element count is not lane-aligned (rare; value irrelevant
    # because the kernel masks by true element count).
    lane_pad = (-total) % LANES
    if lane_pad:
        pf = jnp.pad(pf, (0, lane_pad))
        tf = jnp.pad(tf, (0, lane_pad))
    rows = (total + lane_pad) // LANES
    pf = pf.reshape(rows, LANES)
    tf = tf.reshape(rows, LANES)

    if rows <= TILE_R_MAX:
        # Single block covering the full row extent (always a legal block shape).
        tile_r = rows
    else:
        # 1024 is a multiple of 8 (f32) and 16 (bf16); the last partial block is
        # handled by the in-kernel mask.
        tile_r = TILE_R_MAX

    grid = (pl.cdiv(rows, tile_r),)

    out = pl.pallas_call(
        functools.partial(_dice_kernel, total=int(total), smooth=float(smooth)),
        out_shape=jax.ShapeDtypeStruct((1,), jnp.float32),
        grid_spec=pltpu.PrefetchScalarGridSpec(
            num_scalar_prefetch=0,
            grid=grid,
            in_specs=[
                pl.BlockSpec((tile_r, LANES), lambda i: (i, 0)),
                pl.BlockSpec((tile_r, LANES), lambda i: (i, 0)),
            ],
            out_specs=pl.BlockSpec(memory_space=pltpu.SMEM),
            scratch_shapes=[
                pltpu.VMEM((tile_r, LANES), jnp.float32),   # intersection acc
                pltpu.VMEM((tile_r, LANES), jnp.float32),   # pred+target acc
            ],
        ),
        compiler_params=pltpu.CompilerParams(
            dimension_semantics=("arbitrary",)),   # sequential reduction axis
    )(pf, tf)
    return out[0]


def _dice_loss_ref(pred, target, smooth=1.0):
    p = jax.nn.sigmoid(pred.astype(jnp.float32)).ravel()
    t = target.astype(jnp.float32).ravel()
    intersection = jnp.sum(p * t)
    union = jnp.sum(p) + jnp.sum(t)
    return 1.0 - (2.0 * intersection + smooth) / (union + smooth)


if __name__ == "__main__":
    key = jax.random.PRNGKey(0)
    k1, k2 = jax.random.split(key)
    # NCHW inputs, as in the PyTorch module (pred = logits, target = {0,1} mask)
    pred = jax.random.normal(k1, (2, 4, 16, 16), dtype=jnp.float32)
    target = (jax.random.uniform(k2, (2, 4, 16, 16)) > 0.5).astype(jnp.float32)

    loss = dice_loss(pred, target, smooth=1.0)
    loss = jax.block_until_ready(loss)

    ref = _dice_loss_ref(pred, target, smooth=1.0)
    assert jnp.allclose(loss, ref, atol=1e-5, rtol=1e-5), (loss, ref)
    print("KERNEL_OK")
</pallas_src>

<mosaic_0001>
module attributes {stable_mosaic.version = 11 : i64} {
  func.func @_dice_kernel(%arg0: i32, %arg1: memref<16x128xf32, #tpu.memory_space<vmem>>, %arg2: memref<16x128xf32, #tpu.memory_space<vmem>>, %arg3: memref<1xf32, #tpu.memory_space<smem>>, %arg4: memref<16x128xf32, #tpu.memory_space<vmem>>, %arg5: memref<16x128xf32, #tpu.memory_space<vmem>>) attributes {dimension_semantics = [#tpu.dimension_semantics<arbitrary>], iteration_bounds = array<i64: 1>, scalar_prefetch = 0 : i64, scratch_operands = 2 : i64, tpu.core_type = #tpu.core_type<tc>, window_params = [{transform_indices = @transform_0, window_bounds = array<i64: 16, 128>}, {transform_indices = @transform_1, window_bounds = array<i64: 16, 128>}, {transform_indices = @transform_2, window_bounds = array<i64: 1>}]} {
    %c0_i32 = arith.constant 0 : i32
    %0 = arith.cmpi eq, %arg0, %c0_i32 : i32
    %1 = arith.extui %0 : i1 to i32
    %c0_i32_0 = arith.constant 0 : i32
    %2 = arith.cmpi ne, %1, %c0_i32_0 : i32
    scf.if %2 {
      %cst_16 = arith.constant 0.000000e+00 : f32
      %35 = vector.broadcast %cst_16 : f32 to vector<16x128xf32>
      %c0_17 = arith.constant 0 : index
      %c0_18 = arith.constant 0 : index
      %36 = vector.load %arg4[%c0_17, %c0_18] : memref<16x128xf32, #tpu.memory_space<vmem>>, vector<16x128xf32>
      tpu.vector_store %arg4[%c0_17, %c0_18], %35 {strides = array<i32>} : memref<16x128xf32, #tpu.memory_space<vmem>>, vector<16x128xf32>,
      %cst_19 = arith.constant 0.000000e+00 : f32
      %37 = vector.broadcast %cst_19 : f32 to vector<16x128xf32>
      %c0_20 = arith.constant 0 : index
      %c0_21 = arith.constant 0 : index
      %38 = vector.load %arg5[%c0_20, %c0_21] : memref<16x128xf32, #tpu.memory_space<vmem>>, vector<16x128xf32>
      tpu.vector_store %arg5[%c0_20, %c0_21], %37 {strides = array<i32>} : memref<16x128xf32, #tpu.memory_space<vmem>>, vector<16x128xf32>,
    } else {
    }
    %3 = tpu.iota {dimensions = array<i32: 0>} : vector<16x128xi32>
    %4 = tpu.iota {dimensions = array<i32: 1>} : vector<16x128xi32>
    %c16_i32 = arith.constant 16 : i32
    %5 = arith.muli %arg0, %c16_i32 : i32
    %6 = vector.broadcast %5 : i32 to vector<16x128xi32>
    %7 = arith.addi %6, %3 : vector<16x128xi32>
    %c128_i32 = arith.constant 128 : i32
    %8 = vector.broadcast %c128_i32 : i32 to vector<16x128xi32>
    %9 = arith.muli %7, %8 : vector<16x128xi32>
    %10 = arith.addi %9, %4 : vector<16x128xi32>
    %c2048_i32 = arith.constant 2048 : i32
    %11 = vector.broadcast %c2048_i32 : i32 to vector<16x128xi32>
    %12 = arith.cmpi slt, %10, %11 : vector<16x128xi32>
    %c0 = arith.constant 0 : index
    %c0_1 = arith.constant 0 : index
    %13 = vector.load %arg1[%c0, %c0_1] : memref<16x128xf32, #tpu.memory_space<vmem>>, vector<16x128xf32>
    %14 = arith.negf %13 : vector<16x128xf32>
    %15 = math.exp %14 : vector<16x128xf32>
    %cst = arith.constant 1.000000e+00 : f32
    %16 = vector.broadcast %cst : f32 to vector<16x128xf32>
    %17 = arith.addf %16, %15 : vector<16x128xf32>
    %18 = arith.divf %16, %17 : vector<16x128xf32>
    %cst_2 = arith.constant 0.000000e+00 : f32
    %19 = vector.broadcast %cst_2 : f32 to vector<16x128xf32>
    %20 = arith.select %12, %18, %19 : vector<16x128xi1>, vector<16x128xf32>
    %c0_3 = arith.constant 0 : index
    %c0_4 = arith.constant 0 : index
    %21 = vector.load %arg2[%c0_3, %c0_4] : memref<16x128xf32, #tpu.memory_space<vmem>>, vector<16x128xf32>
    %cst_5 = arith.constant 0.000000e+00 : f32
    %22 = vector.broadcast %cst_5 : f32 to vector<16x128xf32>
    %23 = arith.select %12, %21, %22 : vector<16x128xi1>, vector<16x128xf32>
    %c0_6 = arith.constant 0 : index
    %c0_7 = arith.constant 0 : index
    %24 = vector.load %arg4[%c0_6, %c0_7] : memref<16x128xf32, #tpu.memory_space<vmem>>, vector<16x128xf32>
    %25 = arith.mulf %20, %23 : vector<16x128xf32>
    %26 = arith.addf %24, %25 : vector<16x128xf32>
    %c0_8 = arith.constant 0 : index
    %c0_9 = arith.constant 0 : index
    %27 = vector.load %arg4[%c0_8, %c0_9] : memref<16x128xf32, #tpu.memory_space<vmem>>, vector<16x128xf32>
    tpu.vector_store %arg4[%c0_8, %c0_9], %26 {strides = array<i32>} : memref<16x128xf32, #tpu.memory_space<vmem>>, vector<16x128xf32>,
    %c0_10 = arith.constant 0 : index
    %c0_11 = arith.constant 0 : index
    %28 = vector.load %arg5[%c0_10, %c0_11] : memref<16x128xf32, #tpu.memory_space<vmem>>, vector<16x128xf32>
    %29 = arith.addf %20, %23 : vector<16x128xf32>
    %30 = arith.addf %28, %29 : vector<16x128xf32>
    %c0_12 = arith.constant 0 : index
    %c0_13 = arith.constant 0 : index
    %31 = vector.load %arg5[%c0_12, %c0_13] : memref<16x128xf32, #tpu.memory_space<vmem>>, vector<16x128xf32>
    tpu.vector_store %arg5[%c0_12, %c0_13], %30 {strides = array<i32>} : memref<16x128xf32, #tpu.memory_space<vmem>>, vector<16x128xf32>,
    %c0_i32_14 = arith.constant 0 : i32
    %32 = arith.cmpi eq, %arg0, %c0_i32_14 : i32
    %33 = arith.extui %32 : i1 to i32
    %c0_i32_15 = arith.constant 0 : i32
    %34 = arith.cmpi ne, %33, %c0_i32_15 : i32
    scf.if %34 {
      %c0_16 = arith.constant 0 : index
      %c0_17 = arith.constant 0 : index
      %35 = vector.load %arg4[%c0_16, %c0_17] : memref<16x128xf32, #tpu.memory_space<vmem>>, vector<16x128xf32>
      %36 = vector.shape_cast %35 : vector<16x128xf32> to vector<1x16x128xf32>
      %cst_18 = arith.constant dense<0.000000e+00> : vector<1xf32>
      %37 = vector.multi_reduction <add>, %36, %cst_18 [1, 2] : vector<1x16x128xf32> to vector<1xf32>
      %38 = vector.shape_cast %37 : vector<1xf32> to vector<1x1x1xf32>
      %39 = vector.extract %38[0, 0, 0] : f32 from vector<1x1x1xf32>
      %c0_19 = arith.constant 0 : index
      %c0_20 = arith.constant 0 : index
      %40 = vector.load %arg5[%c0_19, %c0_20] : memref<16x128xf32, #tpu.memory_space<vmem>>, vector<16x128xf32>
      %41 = vector.shape_cast %40 : vector<16x128xf32> to vector<1x16x128xf32>
      %cst_21 = arith.constant dense<0.000000e+00> : vector<1xf32>
      %42 = vector.multi_reduction <add>, %41, %cst_21 [1, 2] : vector<1x16x128xf32> to vector<1xf32>
      %43 = vector.shape_cast %42 : vector<1xf32> to vector<1x1x1xf32>
      %44 = vector.extract %43[0, 0, 0] : f32 from vector<1x1x1xf32>
      %cst_22 = arith.constant 2.000000e+00 : f32
      %45 = arith.mulf %cst_22, %39 : f32
      %cst_23 = arith.constant 1.000000e+00 : f32
      %46 = arith.addf %45, %cst_23 : f32
      %cst_24 = arith.constant 1.000000e+00 : f32
      %47 = arith.addf %44, %cst_24 : f32
      %48 = arith.divf %46, %47 : f32
      %cst_25 = arith.constant 1.000000e+00 : f32
      %49 = arith.subf %cst_25, %48 : f32
      %c0_26 = arith.constant 0 : index
      %50 = memref.load %arg3[%c0_26] : memref<1xf32, #tpu.memory_space<smem>>
      memref.store %49, %arg3[%c0_26] : memref<1xf32, #tpu.memory_space<smem>>
    } else {
    }
    return
  }
  func.func @transform_0(%arg0: i32) -> (i32, i32) {
    %c0_i32 = arith.constant 0 : i32
    %c0_i32_0 = arith.constant 0 : i32
    return %arg0, %c0_i32 : i32, i32
  }
  func.func @transform_1(%arg0: i32) -> (i32, i32) {
    %c0_i32 = arith.constant 0 : i32
    %c0_i32_0 = arith.constant 0 : i32
    return %arg0, %c0_i32 : i32, i32
  }
  func.func @transform_2(%arg0: i32) -> i32 {
    %c0_i32 = arith.constant 0 : i32
    %c0_i32_0 = arith.constant 0 : i32
    return %c0_i32 : i32
  }
}

</mosaic_0001>

<bundles_post_ra>
// kernel: tpu_custom_call.1
= control target key start
LH: loop header
LB: loop body
LE: loop exit
PB: predicated region body
PF: predicated region fallthrough
CT: control target
= control target key end

     0   :  { %7 = vsyncpa [#allocation5], 0  ;;  %s290_s0 = inlined_call_operand.hbm [shape: f32[16,128], index: 0, kind: input, shape index: {}]   ;;  %s291_s1 = inlined_call_operand.hbm [shape: f32[16,128], index: 1, kind: input, shape index: {}]   ;;  %s292_s2 = inlined_call_operand.hbm [shape: f32[1], index: 2, kind: output, shape index: {}]  }
   0x1   :  { %8 = vsyncpa [#allocation8], 0 }
   0x2   :  { %9 = vsyncpa [#allocation6], 0  ;;  %s234_s9 = smov [#allocation4]   ;;  %s174_s13 = scalar_lea.hbm %s290_s0, 256 }
   0x3   :  { %s15_s10 = sshll.u32 %s234_s9, 4  ;;  %p175_p0 = scmp.ne.s32.totalorder %s290_s0, %s174_s13  ;;  %s16_s10 = int_to_ptr.vmem [resolvable:$true] %s15_s10 }
   0x4   :  { %p178_p1 = scmp.lt.u32.totalorder %s174_s13, %s290_s0 }
   0x6   :  { %p180_p2 = pnand %p178_p1, %p175_p0 }
   0x8   :  { %183 = shalt.err (!%p180_p2)
}
   0x9   :  { %s184_s18 = scalar_lea.vmem %s16_s10, 256  ;;  %p189_p4 = scmp.lt.s32.totalorder %s16_s10, %s16_s10 }
   0xa   :  { %p185_p3 = scmp.ne.s32.totalorder %s16_s10, %s184_s18  ;;  %p190_p5 = scmp.lt.s32.totalorder %s184_s18, %s184_s18 }
   0xc   :  { %p191_p6 = por %p190_p5, %p189_p4 }
   0xe   :  { %p192_p7 = pnand %p191_p6, %p185_p3 }
  0x10   :  { %195 = shalt.err (!%p192_p7)
}
  0x11   :  { %s235_s19 = smov 128   ;;  %s236_s20 = smov 8  }
  0x12   :  { %21 = dma.hbm_to_vmem [thread:$0]  %s290_s0, 256, %s16_s10, [#allocation5], %s235_s19, %s235_s19, %s236_s20  }
  0x13   :  { %s237_s23 = smov [#allocation7]   ;;  %s196_s27 = scalar_lea.hbm %s291_s1, 256 }
  0x14   :  { %s27_s24 = sshll.u32 %s237_s23, 4  ;;  %p197_p8 = scmp.ne.s32.totalorder %s291_s1, %s196_s27  ;;  %s28_s24 = int_to_ptr.vmem [resolvable:$true] %s27_s24 }
  0x15   :  { %p200_p9 = scmp.lt.u32.totalorder %s196_s27, %s291_s1 }
  0x17   :  { %p202_p10 = pnand %p200_p9, %p197_p8 }
  0x19   :  { %205 = shalt.err (!%p202_p10)
}
  0x1a   :  { %s206_s4 = scalar_lea.vmem %s28_s24, 256  ;;  %p211_p12 = scmp.lt.s32.totalorder %s28_s24, %s28_s24 }
  0x1b   :  { %p207_p11 = scmp.ne.s32.totalorder %s28_s24, %s206_s4  ;;  %p212_p13 = scmp.lt.s32.totalorder %s206_s4, %s206_s4 }
  0x1d   :  { %p213_p0 = por %p212_p13, %p211_p12 }
  0x1f   :  { %p214_p1 = pnand %p213_p0, %p207_p11 }
  0x21   :  { %217 = shalt.err (!%p214_p1)
}
  0x22   :  { %33 = dma.hbm_to_vmem [thread:$0]  %s291_s1, 256, %s28_s24, [#allocation8], %s235_s19, %s235_s19, %s236_s20  }
  0x23   :  { %228 = dma.done.wait [#allocation5], 256  }
  0x24   :  { %229 = vsyncadd [#allocation5], 4294967040 }
  0x25   :  { %230 = dma.done.wait [#allocation8], 256  }
  0x26   :  { %231 = vsyncadd [#allocation8], 4294967040  ;;  %v63_v0 = vld [vmem:[#allocation4] sm:$0xff]  ;;  %v64_v1 = vld [vmem:[#allocation4 + $0x8] sm:$0xff]  ;;  %v48_v4 = vlaneseq  ;;  %s218_s15 = scalar_lea.hbm %s292_s2, 16 }
  0x27   :  { %v151_v2 = vmul.f32 -1.442695, %v63_v0  ;;  %v152_v3 = vmul.f32 -1.442695, %v64_v1  ;;  %v79_v16 = vld [vmem:[#allocation7] sm:$0xff]  ;;  %v80_v17 = vld [vmem:[#allocation7 + $0x8] sm:$0xff]  ;;  %p219_p2 = scmp.ne.s32.totalorder %s292_s2, %s218_s15  ;;  %p222_p3 = scmp.lt.u32.totalorder %s218_s15, %s292_s2 }
  0x28   :  { %v49_v5 = vshrl.u32 %v48_v4, 7  ;;  %v52_v9 = vand.u32 127, %v48_v4 }
  0x29   :  { %164 = vpow2.f32 %v151_v2  ;;  %p224_p4 = pnand %p222_p3, %p219_p2 }
  0x2a   :  { %166 = vpow2.f32 %v152_v3  ;;  %v50_v6 = vadd.s32 8, %v49_v5  ;;  %v57_v10 = vmul.u32 128, %v49_v5 }
  0x2c   :  { %v58_v12 = vmul.u32 128, %v50_v6  ;;  %v59_v14 = vadd.s32 %v57_v10, %v52_v9 }
  0x2e   :  { %v60_v15 = vadd.s32 %v58_v12, %v52_v9  ;;  %vm61_vm0 = vcmp.lt.s32.totalorder %v59_v14, 2048 }
  0x2f   :  { %v81_v18 = vsel %vm61_vm0, %v79_v16, 0.0 }
  0x30   :  { %vm62_vm1 = vcmp.lt.s32.totalorder %v60_v15, 2048 }
  0x31   :  { %v82_v20 = vsel %vm62_vm1, %v80_v17, 0.0 }
  0x33   :  { %v165_v7 = vpop.eup %164 }
  0x34   :  { %v167_v8 = vpop.eup %166  ;;  %v71_v11 = vadd.f32 1.0, %v165_v7 }
  0x35   :  { %v72_v13 = vadd.f32 1.0, %v167_v8 }
  0x36   :  { %168 = vrcp.f32 %v71_v11 }
  0x37   :  { %170 = vrcp.f32 %v72_v13 }
  0x40   :  { %v169_v19 = vpop.eup %168 }
  0x41   :  { %v171_v21 = vpop.eup %170  ;;  %v77_v22 = vsel %vm61_vm0, %v169_v19, 0.0 }
  0x42   :  { %v78_v23 = vsel %vm62_vm1, %v171_v21, 0.0  ;;  %v85_v24 = vmul.f32 %v81_v18, %v77_v22  ;;  %v93_v26 = vadd.f32 %v81_v18, %v77_v22 }
  0x43   :  { %v86_v25 = vmul.f32 %v82_v20, %v78_v23  ;;  %v94_v27 = vadd.f32 %v82_v20, %v78_v23 }
  0x45   :  { %v104_v28 = vadd.f32 %v86_v25, %v85_v24  ;;  %v116_v29 = vadd.f32 %v94_v27, %v93_v26 }
  0x47   :  { %105 = vadd.xlane.f32.xlu0 %v104_v28 }
  0x4b   :  { %117 = vadd.xlane.f32.xlu0 %v116_v29 }
  0xd4   :  { %v106_v30 = vpop.xlane.xlu0 %105 }
  0xd5   :  { %v107_v31 = vrot.slane %v106_v30, 4 }
  0xd7   :  { %v108_v32 = vadd.f32 %v107_v31, %v106_v30 }
  0xd8   :  { %v118_v33 = vpop.xlane.xlu0 %117 }
  0xd9   :  { %v109_v34 = vrot.slane %v108_v32, 2  ;;  %v119_v35 = vrot.slane %v118_v33, 4 }
  0xdb   :  { %v120_v36 = vadd.f32 %v119_v35, %v118_v33  ;;  %v110_v37 = vadd.f32 %v109_v34, %v108_v32 }
  0xdd   :  { %v121_v38 = vrot.slane %v120_v36, 2  ;;  %v111_v39 = vrot.slane %v110_v37, 1 }
  0xdf   :  { %v122_v40 = vadd.f32 %v121_v38, %v120_v36  ;;  %v112_v41 = vadd.f32 %v111_v39, %v110_v37 }
  0xe1   :  { %153 = vpush %v112_v41  ;;  %v123_v42 = vrot.slane %v122_v40, 1 }
  0xe3   :  { %v124_v43 = vadd.f32 %v123_v42, %v122_v40 }
  0xe5   :  { %155 = vpush %v124_v43 }
 0x112   :  { %s154_s1 = spop %153 }
 0x113   :  { %s126_s8 = smul.f32 2.0, %s154_s1 }
 0x115   :  { %s127_s9 = sadd.f32 1.0, %s126_s8 }
 0x116   :  { %s156_s6 = spop %155 }
 0x117   :  { %s128_s7 = sadd.f32 1.0, %s156_s6 }
 0x119   :  { %v129_v44 = vstv %s128_s7 }
 0x11a   :  { %172 = vrcp.f32 %v129_v44 }
 0x124   :  { %v173_v45 = vpop.eup %172 }
 0x125   :  { %157 = vpush %v173_v45 }
 0x156   :  { %s158_s10 = spop %157 }
 0x157   :  { %s132_s11 = smul.f32 %s158_s10, %s127_s9 }
 0x159   :  { %s133_s12 = ssub.f32 1.0, %s132_s11 }
 0x15b   :  { %135 = sst [smem:[#allocation9]] %s133_s12 }
 0x15c   :  { %227 = shalt.err (!%p224_p4)
}
 0x15d   :  { %s238_s20 = smov [#allocation9]  }
 0x15e   :  { %143 = dma.smem_to_hbm %s238_s20, 16, %s292_s2, [#allocation6]  }
 0x15f   :  { %232 = dma.done.wait [#allocation6], 16  }
 0x160   :  { %233 = vsyncadd [#allocation6], 4294967280 }
 0x161   :  { %147 = sfence }
 0x162   :  { %148 = vsyncpa [#allocation5], 1 }
 0x163   :  { %149 = vsyncpa [#allocation8], 1 }
 0x164   :  { %150 = vsyncpa [#allocation6], 1 }

</bundles_post_ra>
